<compile_context>
chip_gen: v7x
topology: tpu7x:2x2x1
jax: 0.10.0
libtpu: 0.0.40
codegen_flags: <defaults>
</compile_context>

<pallas_src>
import jax
import jax.numpy as jnp
from jax import lax
from jax.experimental import pallas as pl
from jax.experimental.pallas import tpu as pltpu


def _src_loss_kernel(inv_gamma_ref, q_ref, k_ref, loss_ref, w_ref):
    eps = jnp.float32(1e-7)
    inv_g = inv_gamma_ref[0, 0]  # runtime scalar from SMEM (no recompile per epoch)

    q = q_ref[0].astype(jnp.float32)   # (N, D)
    k = k_ref[0].astype(jnp.float32)   # (N, D)

    # Normalize(power=2): x / (||x||_2 + 1e-7) along channels.
    # Approx reciprocal rides the EUP slot; VPU keeps the cross-vreg reductions.
    q_inv = pl.reciprocal(jnp.sqrt(jnp.sum(q * q, axis=1, keepdims=True)) + eps,
                          approx=True)
    k_inv = pl.reciprocal(jnp.sqrt(jnp.sum(k * k, axis=1, keepdims=True)) + eps,
                          approx=True)
    qn = q * q_inv
    kn = k * k_inv

    # spatial_q = qn @ kn^T ; spatial_k = kn @ qn^T — both on the MXU (avoids an
    # XLU transpose).  bf16 operands are MXU-native on v5e/v6e/v7x; accumulation
    # stays f32.  (~1e-3 absolute shift in similarities vs the f32 reference.)
    qn_b = qn.astype(jnp.bfloat16)
    kn_b = kn.astype(jnp.bfloat16)
    dims = (((1,), (1,)), ((), ()))
    s_q = lax.dot_general(qn_b, kn_b, dims, preferred_element_type=jnp.float32)  # (N, N)
    s_k = lax.dot_general(kn_b, qn_b, dims, preferred_element_type=jnp.float32)  # (N, N)

    n = s_q.shape[0]
    diag = (lax.broadcasted_iota(jnp.int32, (n, n), 0)
            == lax.broadcasted_iota(jnp.int32, (n, n), 1))

    # weight_seed.masked_fill_(diag, -10); w = softmax(ws/gamma, dim=2); w /= rowmax(w)
    # Collapsed exactly to exp(ws/gamma - rowmax(ws/gamma)) (rowmax of the result is 1).
    # Note: the mask is applied BEFORE the /gamma, matching the PyTorch ordering.
    ws = jnp.where(diag, jnp.float32(-10.0) * inv_g, s_k * inv_g)
    w_ref[0] = jnp.exp(ws - jnp.max(ws, axis=1, keepdims=True))

    # Softmax over dim=1 of the (1,N,N) tensors == axis 0 of the (N,N) matrices.
    # Kept as axis-0 (sublane) softmaxes on purpose: VPU folds + one small XLU
    # sublane reduce each, while EUP (3 N^2 exps + 1 N^2 log) is the binding slot.
    def softmax_and_log_axis0(x):
        xs = x - jnp.max(x, axis=0, keepdims=True)
        ex = jnp.exp(xs)
        s = jnp.sum(ex, axis=0, keepdims=True)       # (1, N)
        p = ex * pl.reciprocal(s, approx=True)       # p sums to 1 +- ~1e-4 (deliberate)
        lp = xs - jnp.log(s)                         # exact log-softmax (no N^2 logs)
        return p, lp

    p1, lp1 = softmax_and_log_axis0(s_q)
    p2, lp2 = softmax_and_log_axis0(s_k)

    # get_jsd: 0.5*(KL(p1||m) + KL(p2||m)), m = 0.5*(p1+p2).  PyTorch's
    # KLDivLoss(reduction='sum', log_target=True)(log m, log p) == sum(p*(log p - log m)),
    # so a plain sum over all N^2 entries matches the reference reduction.
    # TODO(synk): the reference get_jsd has a typo (`0.5 * (kl1, +kl2)` builds a tuple
    # and would raise at runtime); implemented the intended Jensen-Shannon divergence.
    log_m = jnp.log(0.5 * (p1 + p2))
    integrand = p1 * (lp1 - log_m) + p2 * (lp2 - log_m)   # single fused reduction
    loss_ref[...] = jnp.full((1, 1, 1), 0.5 * jnp.sum(integrand), dtype=jnp.float32)


def _make_src_loss_call(B, N, D):
    cost = pl.CostEstimate(
        flops=int(B * (4 * N * N * D + 12 * N * N)),
        transcendentals=int(B * 4 * N * N),
        bytes_accessed=int(B * (2 * N * D * 4 + N * N * 4 + 4)),
    )
    return pl.pallas_call(
        _src_loss_kernel,
        grid=(B,),
        out_shape=(jax.ShapeDtypeStruct((B, 1, 1), jnp.float32),
                   jax.ShapeDtypeStruct((B, N, N), jnp.float32)),
        in_specs=[pl.BlockSpec(memory_space=pltpu.MemorySpace.SMEM),   # 1/gamma scalar
                  pl.BlockSpec((1, N, D), lambda b: (b, 0, 0)),
                  pl.BlockSpec((1, N, D), lambda b: (b, 0, 0))],
        out_specs=(pl.BlockSpec((1, 1, 1), lambda b: (b, 0, 0)),
                   pl.BlockSpec((1, N, N), lambda b: (b, 0, 0))),
        compiler_params=pltpu.CompilerParams(dimension_semantics=("parallel",)),
        cost_estimate=cost,
    )


@jax.jit
def _src_loss_pallas(feat_q_b, feat_k_b, inv_gamma):
    """Batched fused kernel: feat_*_b are (B, N, D); returns ((B,), (B, N, N))."""
    B, N, D = feat_q_b.shape
    inv_gamma_arr = jnp.reshape(jnp.asarray(inv_gamma, jnp.float32), (1, 1))
    loss, w = _make_src_loss_call(B, N, D)(
        inv_gamma_arr, feat_q_b.astype(jnp.float32), feat_k_b.astype(jnp.float32))
    return loss.reshape(B), w


def _curriculum_gamma(HDCE_gamma, use_curriculum, HDCE_gamma_min, n_epochs,
                      n_epochs_decay, step_gamma, step_gamma_epoch, epoch):
    # Pure host-side scalar arithmetic, mirroring the PyTorch code exactly.
    gamma = float(HDCE_gamma)
    if use_curriculum:
        gamma = gamma + (HDCE_gamma_min - gamma) * epoch / (n_epochs + n_epochs_decay)
        if step_gamma & (epoch > step_gamma_epoch):
            gamma = 1.0
    return gamma


def src_loss_forward(feat_q, feat_k, *, n_patches, HDCE_gamma, use_curriculum,
                     HDCE_gamma_min, n_epochs, n_epochs_decay, step_gamma,
                     step_gamma_epoch, only_weight=False, epoch=None):
    """JAX/Pallas equivalent of SRC_Loss.forward (batch_dim_for_bmm = 1)."""
    N, D = feat_q.shape
    assert N == n_patches, "n_patches must match the number of feature rows"

    gamma = _curriculum_gamma(HDCE_gamma, use_curriculum, HDCE_gamma_min,
                              n_epochs, n_epochs_decay, step_gamma,
                              step_gamma_epoch, epoch)
    losses, w = _src_loss_pallas(feat_q[None], feat_k[None],
                                 jnp.float32(1.0 / gamma))
    weight_out = w  # (1, n_patches, n_patches), matching batch_dim_for_bmm=1
    if only_weight:
        return 0, weight_out
    return losses[0], weight_out


def src_loss_forward_batched(feat_q_b, feat_k_b, *, n_patches, HDCE_gamma,
                             use_curriculum, HDCE_gamma_min, n_epochs,
                             n_epochs_decay, step_gamma, step_gamma_epoch,
                             epoch=None):
    """Amortized variant: B independent (N, D) instances in one launch.

    One grid point per instance, parallel across TensorCores on v7x.  Returns
    per-instance losses (B,) and weights (B, n_patches, n_patches).
    """
    B, N, D = feat_q_b.shape
    assert N == n_patches, "n_patches must match the number of feature rows"
    gamma = _curriculum_gamma(HDCE_gamma, use_curriculum, HDCE_gamma_min,
                              n_epochs, n_epochs_decay, step_gamma,
                              step_gamma_epoch, epoch)
    return _src_loss_pallas(feat_q_b, feat_k_b, jnp.float32(1.0 / gamma))


if __name__ == "__main__":
    key = jax.random.PRNGKey(0)
    n_patches, dim = 64, 32
    kq, kk = jax.random.split(key)
    feat_q = jax.random.normal(kq, (n_patches, dim), dtype=jnp.float32)
    feat_k = jax.random.normal(kk, (n_patches, dim), dtype=jnp.float32)

    common = dict(
        n_patches=n_patches,
        HDCE_gamma=50.0,
        use_curriculum=True,
        HDCE_gamma_min=10.0,
        n_epochs=100,
        n_epochs_decay=100,
        step_gamma=False,
        step_gamma_epoch=200,
    )

    # Module-equivalent single-instance forward (B = 1 grid point).
    loss, weight_out = src_loss_forward(feat_q, feat_k, epoch=5, **common)
    jax.block_until_ready((loss, weight_out))
    assert weight_out.shape == (1, n_patches, n_patches)
    assert loss.shape == ()

    # Different epoch -> different gamma; gamma is a runtime SMEM scalar, so the
    # same compiled executable is reused (no per-epoch retrace).
    loss2, weight_out2 = src_loss_forward(feat_q, feat_k, epoch=37, **common)
    jax.block_until_ready((loss2, weight_out2))
    assert weight_out2.shape == (1, n_patches, n_patches)

    # Batched variant: B instances amortize launch/DMA overhead and engage the
    # second TensorCore on v7x via the parallel batch grid axis.
    B = 4
    kqb, kkb = jax.random.split(jax.random.PRNGKey(1))
    fq_b = jax.random.normal(kqb, (B, n_patches, dim), dtype=jnp.float32)
    fk_b = jax.random.normal(kkb, (B, n_patches, dim), dtype=jnp.float32)
    losses_b, weights_b = src_loss_forward_batched(fq_b, fk_b, epoch=5, **common)
    jax.block_until_ready((losses_b, weights_b))
    assert losses_b.shape == (B,)
    assert weights_b.shape == (B, n_patches, n_patches)

    print("KERNEL_OK")
</pallas_src>

<mosaic_0001>
module attributes {stable_mosaic.version = 11 : i64} {
  func.func @_src_loss_kernel(%arg0: i32, %arg1: memref<1x1xf32, #tpu.memory_space<smem>>, %arg2: memref<1x64x32xf32, #tpu.memory_space<vmem>>, %arg3: memref<1x64x32xf32, #tpu.memory_space<vmem>>, %arg4: memref<1x1x1xf32, #tpu.memory_space<vmem>>, %arg5: memref<1x64x64xf32, #tpu.memory_space<vmem>>) attributes {dimension_semantics = [#tpu.dimension_semantics<parallel>], iteration_bounds = array<i64: 1>, scalar_prefetch = 0 : i64, scratch_operands = 0 : i64, tpu.core_type = #tpu.core_type<tc>, window_params = [{transform_indices = @transform_0, window_bounds = array<i64: 1, 1>}, {transform_indices = @transform_1, window_bounds = array<i64: 1, 64, 32>}, {transform_indices = @transform_2, window_bounds = array<i64: 1, 64, 32>}, {transform_indices = @transform_3, window_bounds = array<i64: 1, 1, 1>}, {transform_indices = @transform_4, window_bounds = array<i64: 1, 64, 64>}]} {
    %c0 = arith.constant 0 : index
    %c0_0 = arith.constant 0 : index
    %0 = memref.load %arg1[%c0, %c0_0] : memref<1x1xf32, #tpu.memory_space<smem>>
    %c0_1 = arith.constant 0 : index
    %c0_2 = arith.constant 0 : index
    %c0_3 = arith.constant 0 : index
    %1 = vector.load %arg2[%c0_1, %c0_2, %c0_3] : memref<1x64x32xf32, #tpu.memory_space<vmem>>, vector<1x64x32xf32>
    %2 = vector.shape_cast %1 : vector<1x64x32xf32> to vector<64x32xf32>
    %c0_4 = arith.constant 0 : index
    %c0_5 = arith.constant 0 : index
    %c0_6 = arith.constant 0 : index
    %3 = vector.load %arg3[%c0_4, %c0_5, %c0_6] : memref<1x64x32xf32, #tpu.memory_space<vmem>>, vector<1x64x32xf32>
    %4 = vector.shape_cast %3 : vector<1x64x32xf32> to vector<64x32xf32>
    %5 = arith.mulf %2, %2 : vector<64x32xf32>
    %cst = arith.constant dense<0.000000e+00> : vector<64xf32>
    %6 = vector.multi_reduction <add>, %5, %cst [1] : vector<64x32xf32> to vector<64xf32>
    %7 = vector.shape_cast %6 : vector<64xf32> to vector<64x1xf32>
    %8 = math.sqrt %7 : vector<64x1xf32>
    %cst_7 = arith.constant 1.000000e-07 : f32
    %9 = vector.broadcast %cst_7 : f32 to vector<64x1xf32>
    %10 = arith.addf %8, %9 : vector<64x1xf32>
    %11 = tpu.reciprocal %10 {approx = true} : vector<64x1xf32> -> vector<64x1xf32>
    %12 = arith.mulf %4, %4 : vector<64x32xf32>
    %cst_8 = arith.constant dense<0.000000e+00> : vector<64xf32>
    %13 = vector.multi_reduction <add>, %12, %cst_8 [1] : vector<64x32xf32> to vector<64xf32>
    %14 = vector.shape_cast %13 : vector<64xf32> to vector<64x1xf32>
    %15 = math.sqrt %14 : vector<64x1xf32>
    %cst_9 = arith.constant 1.000000e-07 : f32
    %16 = vector.broadcast %cst_9 : f32 to vector<64x1xf32>
    %17 = arith.addf %15, %16 : vector<64x1xf32>
    %18 = tpu.reciprocal %17 {approx = true} : vector<64x1xf32> -> vector<64x1xf32>
    %19 = vector.broadcast %11 : vector<64x1xf32> to vector<64x32xf32>
    %20 = arith.mulf %2, %19 : vector<64x32xf32>
    %21 = vector.broadcast %18 : vector<64x1xf32> to vector<64x32xf32>
    %22 = arith.mulf %4, %21 : vector<64x32xf32>
    %23 = arith.truncf %20 : vector<64x32xf32> to vector<64x32xbf16>
    %24 = arith.truncf %22 : vector<64x32xf32> to vector<64x32xbf16>
    %cst_10 = arith.constant dense<0.000000e+00> : vector<64x64xf32>
    %25 = tpu.matmul %23, %24, %cst_10 {dimension_numbers = #tpu.dot_dimension_numbers<[1], [1], [0], [0], [0, 0, 1, 0], [], []>} : vector<64x32xbf16>, vector<64x32xbf16>, vector<64x64xf32> -> vector<64x64xf32>
    %cst_11 = arith.constant dense<0.000000e+00> : vector<64x64xf32>
    %26 = tpu.matmul %24, %23, %cst_11 {dimension_numbers = #tpu.dot_dimension_numbers<[1], [1], [0], [0], [0, 0, 1, 0], [], []>} : vector<64x32xbf16>, vector<64x32xbf16>, vector<64x64xf32> -> vector<64x64xf32>
    %27 = tpu.iota {dimensions = array<i32: 0>} : vector<64x64xi32>
    %28 = tpu.iota {dimensions = array<i32: 1>} : vector<64x64xi32>
    %29 = arith.cmpi eq, %27, %28 : vector<64x64xi32>
    %cst_12 = arith.constant -1.000000e+01 : f32
    %30 = arith.mulf %cst_12, %0 : f32
    %31 = vector.broadcast %0 : f32 to vector<64x64xf32>
    %32 = arith.mulf %26, %31 : vector<64x64xf32>
    %33 = vector.broadcast %30 : f32 to vector<64x64xf32>
    %34 = arith.select %29, %33, %32 : vector<64x64xi1>, vector<64x64xf32>
    %cst_13 = arith.constant dense<0xFF800000> : vector<64xf32>
    %35 = vector.multi_reduction <maximumf>, %34, %cst_13 [1] : vector<64x64xf32> to vector<64xf32>
    %36 = vector.shape_cast %35 : vector<64xf32> to vector<64x1xf32>
    %37 = vector.broadcast %36 : vector<64x1xf32> to vector<64x64xf32>
    %38 = arith.subf %34, %37 : vector<64x64xf32>
    %39 = math.exp %38 : vector<64x64xf32>
    %c0_14 = arith.constant 0 : index
    %c0_15 = arith.constant 0 : index
    %c0_16 = arith.constant 0 : index
    %40 = vector.load %arg5[%c0_14, %c0_15, %c0_16] : memref<1x64x64xf32, #tpu.memory_space<vmem>>, vector<1x64x64xf32>
    %41 = vector.shape_cast %40 : vector<1x64x64xf32> to vector<64x64xf32>
    %42 = vector.shape_cast %39 : vector<64x64xf32> to vector<1x64x64xf32>
    tpu.vector_store %arg5[%c0_14, %c0_15, %c0_16], %42 {strides = array<i32>} : memref<1x64x64xf32, #tpu.memory_space<vmem>>, vector<1x64x64xf32>,
    %cst_17 = arith.constant dense<0xFF800000> : vector<64xf32>
    %43 = vector.multi_reduction <maximumf>, %25, %cst_17 [0] : vector<64x64xf32> to vector<64xf32>
    %44 = vector.shape_cast %43 : vector<64xf32> to vector<1x64xf32>
    %45 = vector.broadcast %44 : vector<1x64xf32> to vector<64x64xf32>
    %46 = arith.subf %25, %45 : vector<64x64xf32>
    %47 = math.exp %46 : vector<64x64xf32>
    %cst_18 = arith.constant dense<0.000000e+00> : vector<64xf32>
    %48 = vector.multi_reduction <add>, %47, %cst_18 [0] : vector<64x64xf32> to vector<64xf32>
    %49 = vector.shape_cast %48 : vector<64xf32> to vector<1x64xf32>
    %50 = tpu.reciprocal %49 {approx = true} : vector<1x64xf32> -> vector<1x64xf32>
    %51 = vector.broadcast %50 : vector<1x64xf32> to vector<64x64xf32>
    %52 = arith.mulf %47, %51 : vector<64x64xf32>
    %53 = math.log %49 : vector<1x64xf32>
    %54 = vector.broadcast %53 : vector<1x64xf32> to vector<64x64xf32>
    %55 = arith.subf %46, %54 : vector<64x64xf32>
    %cst_19 = arith.constant dense<0xFF800000> : vector<64xf32>
    %56 = vector.multi_reduction <maximumf>, %26, %cst_19 [0] : vector<64x64xf32> to vector<64xf32>
    %57 = vector.shape_cast %56 : vector<64xf32> to vector<1x64xf32>
    %58 = vector.broadcast %57 : vector<1x64xf32> to vector<64x64xf32>
    %59 = arith.subf %26, %58 : vector<64x64xf32>
    %60 = math.exp %59 : vector<64x64xf32>
    %cst_20 = arith.constant dense<0.000000e+00> : vector<64xf32>
    %61 = vector.multi_reduction <add>, %60, %cst_20 [0] : vector<64x64xf32> to vector<64xf32>
    %62 = vector.shape_cast %61 : vector<64xf32> to vector<1x64xf32>
    %63 = tpu.reciprocal %62 {approx = true} : vector<1x64xf32> -> vector<1x64xf32>
    %64 = vector.broadcast %63 : vector<1x64xf32> to vector<64x64xf32>
    %65 = arith.mulf %60, %64 : vector<64x64xf32>
    %66 = math.log %62 : vector<1x64xf32>
    %67 = vector.broadcast %66 : vector<1x64xf32> to vector<64x64xf32>
    %68 = arith.subf %59, %67 : vector<64x64xf32>
    %69 = arith.addf %52, %65 : vector<64x64xf32>
    %cst_21 = arith.constant 5.000000e-01 : f32
    %70 = vector.broadcast %cst_21 : f32 to vector<64x64xf32>
    %71 = arith.mulf %70, %69 : vector<64x64xf32>
    %72 = math.log %71 : vector<64x64xf32>
    %73 = arith.subf %55, %72 : vector<64x64xf32>
    %74 = arith.mulf %52, %73 : vector<64x64xf32>
    %75 = arith.subf %68, %72 : vector<64x64xf32>
    %76 = arith.mulf %65, %75 : vector<64x64xf32>
    %77 = arith.addf %74, %76 : vector<64x64xf32>
    %78 = vector.shape_cast %77 : vector<64x64xf32> to vector<1x64x64xf32>
    %cst_22 = arith.constant dense<0.000000e+00> : vector<1xf32>
    %79 = vector.multi_reduction <add>, %78, %cst_22 [1, 2] : vector<1x64x64xf32> to vector<1xf32>
    %80 = vector.shape_cast %79 : vector<1xf32> to vector<1x1x1xf32>
    %81 = vector.extract %80[0, 0, 0] : f32 from vector<1x1x1xf32>
    %cst_23 = arith.constant 5.000000e-01 : f32
    %82 = arith.mulf %cst_23, %81 : f32
    %83 = vector.broadcast %82 : f32 to vector<1x1x1xf32>
    %c0_24 = arith.constant 0 : index
    %c0_25 = arith.constant 0 : index
    %c0_26 = arith.constant 0 : index
    %84 = vector.load %arg4[%c0_24, %c0_25, %c0_26] : memref<1x1x1xf32, #tpu.memory_space<vmem>>, vector<1x1x1xf32>
    tpu.vector_store %arg4[%c0_24, %c0_25, %c0_26], %83 {strides = array<i32>} : memref<1x1x1xf32, #tpu.memory_space<vmem>>, vector<1x1x1xf32>,
    return
  }
  func.func @transform_0(%arg0: i32) -> (i32, i32) {
    %c0_i32 = arith.constant 0 : i32
    %c0_i32_0 = arith.constant 0 : i32
    %c0_i32_1 = arith.constant 0 : i32
    return %c0_i32, %c0_i32_0 : i32, i32
  }
  func.func @transform_1(%arg0: i32) -> (i32, i32, i32) {
    %c0_i32 = arith.constant 0 : i32
    %c0_i32_0 = arith.constant 0 : i32
    %c0_i32_1 = arith.constant 0 : i32
    return %arg0, %c0_i32, %c0_i32_0 : i32, i32, i32
  }
  func.func @transform_2(%arg0: i32) -> (i32, i32, i32) {
    %c0_i32 = arith.constant 0 : i32
    %c0_i32_0 = arith.constant 0 : i32
    %c0_i32_1 = arith.constant 0 : i32
    return %arg0, %c0_i32, %c0_i32_0 : i32, i32, i32
  }
  func.func @transform_3(%arg0: i32) -> (i32, i32, i32) {
    %c0_i32 = arith.constant 0 : i32
    %c0_i32_0 = arith.constant 0 : i32
    %c0_i32_1 = arith.constant 0 : i32
    return %arg0, %c0_i32, %c0_i32_0 : i32, i32, i32
  }
  func.func @transform_4(%arg0: i32) -> (i32, i32, i32) {
    %c0_i32 = arith.constant 0 : i32
    %c0_i32_0 = arith.constant 0 : i32
    %c0_i32_1 = arith.constant 0 : i32
    return %arg0, %c0_i32, %c0_i32_0 : i32, i32, i32
  }
}

</mosaic_0001>

<bundles_post_ra>
// kernel: _src_loss_pallas.1
= control target key start
LH: loop header
LB: loop body
LE: loop exit
PB: predicated region body
PF: predicated region fallthrough
CT: control target
= control target key end

     0   :  { %11 = vsyncpa [#allocation4], 0  ;;  %vm45_vm0 = vcmask 261120   ;;  %s1830_s0 = inlined_call_operand.<no memory space> [shape: f32[1,1], index: 0, kind: input, shape index: {}]   ;;  %s1831_s1 = inlined_call_operand.vmem [shape: f32[1,64,32], index: 1, kind: input, shape index: {}]   ;;  %s1832_s2 = inlined_call_operand.vmem [shape: f32[1,64,32], index: 2, kind: input, shape index: {}]   ;;  %s1833_s3 = inlined_call_operand.hbm [shape: f32[1,1,1], index: 3, kind: output, shape index: {0}]   ;;  %s1834_s4 = inlined_call_operand.hbm [shape: f32[1,64,64], index: 4, kind: output, shape index: {1}]  }
   0x1   :  { %v1105_v0 = vld [vmem:[%s1832_s2] sm:$0xff]  ;;  %v1115_v2 = vld [vmem:[%s1832_s2 + $0x8] sm:$0xff]  ;;  %v1133_v8 = vld [vmem:[%s1831_s1 + $0x18] sm:$0xff] }
   0x2   :  { %v1110_v1 = vld [vmem:[%s1831_s1] sm:$0xff]  ;;  %v142_v3 = vmul.f32 %v1105_v0, %v1105_v0  ;;  %v143_v5 = vmul.f32 %v1115_v2, %v1115_v2  ;;  %v1126_v6 = vld [vmem:[%s1831_s1 + $0x8] sm:$0xff]  ;;  %v1138_v9 = vld [vmem:[%s1831_s1 + $0x10] sm:$0xff]  ;;  %v40_v14 = vmul.f32 %v1133_v8, %v1133_v8 }
   0x3   :  { %v37_v4 = vmul.f32 %v1110_v1, %v1110_v1  ;;  %v38_v7 = vmul.f32 %v1126_v6, %v1126_v6  ;;  %v39_v15 = vmul.f32 %v1138_v9, %v1138_v9 }
   0x4   :  { %v150_v10 = vsel %vm45_vm0, %v142_v3, 0.0  ;;  %v153_v12 = vsel %vm45_vm0, %v143_v5, 0.0 }
   0x5   :  { %v46_v11 = vsel %vm45_vm0, %v37_v4, 0.0  ;;  %151 = vadd.xlane.f32.xlu1 %v150_v10  ;;  %v49_v13 = vsel %vm45_vm0, %v38_v7, 0.0 }
   0x6   :  { %47 = vadd.xlane.f32.xlu0 %v46_v11 }
   0x7   :  { %12 = vsyncpa [#allocation6], 0  ;;  %v1151_v16 = vld [vmem:[%s1832_s2 + $0x18] sm:$0xff]  ;;  %v1156_v17 = vld [vmem:[%s1832_s2 + $0x10] sm:$0xff]  ;;  %v55_v18 = vsel %vm45_vm0, %v40_v14, 0.0  ;;  %v52_v19 = vsel %vm45_vm0, %v39_v15, 0.0 }
   0x8   :  { %v145_v20 = vmul.f32 %v1151_v16, %v1151_v16  ;;  %v144_v21 = vmul.f32 %v1156_v17, %v1156_v17  ;;  %v1167_v22 = vld [vmem:[%s1831_s1 + $0x28] sm:$0xff]  ;;  %v1172_v23 = vld [vmem:[%s1831_s1 + $0x20] sm:$0xff]  ;;  %v1199_v34 = vld [vmem:[%s1831_s1 + $0x38] sm:$0xff]  ;;  %s443_s21 = smul.f32 -10.0, %s1830_s0 }
   0x9   :  { %154 = vadd.xlane.f32.xlu1 %v153_v12  ;;  %v42_v26 = vmul.f32 %v1167_v22, %v1167_v22  ;;  %v41_v27 = vmul.f32 %v1172_v23, %v1172_v23  ;;  %v1183_v28 = vld [vmem:[%s1832_s2 + $0x28] sm:$0xff]  ;;  %v1188_v29 = vld [vmem:[%s1832_s2 + $0x20] sm:$0xff]  ;;  %v1204_v35 = vld [vmem:[%s1831_s1 + $0x30] sm:$0xff]  ;;  %v44_v38 = vmul.f32 %v1199_v34, %v1199_v34 }
   0xa   :  { %50 = vadd.xlane.f32.xlu0 %v49_v13  ;;  %v159_v24 = vsel %vm45_vm0, %v145_v20, 0.0  ;;  %v156_v25 = vsel %vm45_vm0, %v144_v21, 0.0  ;;  %v147_v32 = vmul.f32 %v1183_v28, %v1183_v28  ;;  %v146_v33 = vmul.f32 %v1188_v29, %v1188_v29  ;;  %v1215_v40 = vld [vmem:[%s1832_s2 + $0x38] sm:$0xff]  ;;  %v1220_v41 = vld [vmem:[%s1832_s2 + $0x30] sm:$0xff] }
   0xb   :  { %v61_v30 = vsel %vm45_vm0, %v42_v26, 0.0  ;;  %v58_v31 = vsel %vm45_vm0, %v41_v27, 0.0  ;;  %v43_v39 = vmul.f32 %v1204_v35, %v1204_v35  ;;  %v67_v42 = vsel %vm45_vm0, %v44_v38, 0.0 }
   0xc   :  { %v165_v36 = vsel %vm45_vm0, %v147_v32, 0.0  ;;  %v162_v37 = vsel %vm45_vm0, %v146_v33, 0.0  ;;  %v149_v44 = vmul.f32 %v1215_v40, %v1215_v40  ;;  %v148_v45 = vmul.f32 %v1220_v41, %v1220_v41 }
   0xd   :  { %56 = vadd.xlane.f32.xlu1 %v55_v18  ;;  %v64_v43 = vsel %vm45_vm0, %v43_v39, 0.0 }
   0xe   :  { %53 = vadd.xlane.f32.xlu0 %v52_v19  ;;  %v171_v46 = vsel %vm45_vm0, %v149_v44, 0.0  ;;  %v168_v47 = vsel %vm45_vm0, %v148_v45, 0.0 }
  0x11   :  { %160 = vadd.xlane.f32.xlu1 %v159_v24 }
  0x12   :  { %157 = vadd.xlane.f32.xlu0 %v156_v25 }
  0x15   :  { %62 = vadd.xlane.f32.xlu1 %v61_v30 }
  0x16   :  { %59 = vadd.xlane.f32.xlu0 %v58_v31 }
  0x19   :  { %166 = vadd.xlane.f32.xlu1 %v165_v36 }
  0x1a   :  { %163 = vadd.xlane.f32.xlu0 %v162_v37 }
  0x1d   :  { %68 = vadd.xlane.f32.xlu1 %v67_v42 }
  0x1e   :  { %65 = vadd.xlane.f32.xlu0 %v64_v43 }
  0x21   :  { %172 = vadd.xlane.f32.xlu1 %v171_v46 }
  0x22   :  { %169 = vadd.xlane.f32.xlu0 %v168_v47 }
  0x92   :  { %v152_v48 = vpop.xlane.xlu1 %151 }
  0x93   :  { %v48_v49 = vpop.xlane.xlu0 %47  ;;  %889 = vrsqrt.f32 %v152_v48  ;;  %vm176_vm1 = vcmp.eq.f32.partialorder %v152_v48, inf  ;;  %vm178_vm2 = vcmp.eq.f32.partialorder %v152_v48, 0.0  ;;  %v179_v54 = vand.u32 2147483648, %v152_v48 }
  0x94   :  { %891 = vrsqrt.f32 %v48_v49  ;;  %vm72_vm3 = vcmp.eq.f32.partialorder %v48_v49, inf  ;;  %vm74_vm4 = vcmp.eq.f32.partialorder %v48_v49, 0.0  ;;  %v75_v56 = vand.u32 2147483648, %v48_v49 }
  0x96   :  { %v155_v50 = vpop.xlane.xlu1 %154 }
  0x97   :  { %v51_v51 = vpop.xlane.xlu0 %50  ;;  %893 = vrsqrt.f32 %v155_v50  ;;  %vm183_vm5 = vcmp.eq.f32.partialorder %v155_v50, inf  ;;  %vm185_vm6 = vcmp.eq.f32.partialorder %v155_v50, 0.0  ;;  %v186_v59 = vand.u32 2147483648, %v155_v50 }
  0x98   :  { %895 = vrsqrt.f32 %v51_v51  ;;  %vm79_vm7 = vcmp.eq.f32.partialorder %v51_v51, inf  ;;  %vm81_vm8 = vcmp.eq.f32.partialorder %v51_v51, 0.0  ;;  %v82_v63 = vand.u32 2147483648, %v51_v51 }
  0x9a   :  { %v1230_v52 = vpop.xlane.xlu1 %56 }
  0x9b   :  { %v1232_v53 = vpop.xlane.xlu0 %53  ;;  %897 = vrsqrt.f32 %v1230_v52  ;;  %vm93_vm9 = vcmp.eq.f32.partialorder %v1230_v52, inf  ;;  %vm95_vm10 = vcmp.eq.f32.partialorder %v1230_v52, 0.0  ;;  %v96_v10 = vand.u32 2147483648, %v1230_v52 }
  0x9c   :  { %899 = vrsqrt.f32 %v1232_v53  ;;  %vm86_vm11 = vcmp.eq.f32.partialorder %v1232_v53, inf  ;;  %vm88_vm12 = vcmp.eq.f32.partialorder %v1232_v53, 0.0  ;;  %v89_v21 = vand.u32 2147483648, %v1232_v53 }
  0x9d   :  { %v890_v55 = vpop.eup %889 }
  0x9e   :  { %v892_v57 = vpop.eup %891  ;;  %v175_v58 = vmul.f32 %v890_v55, %v152_v48  ;;  %v1236_v60 = vpop.xlane.xlu1 %160 }
  0x9f   :  { %v1238_v61 = vpop.xlane.xlu0 %157  ;;  %v71_v62 = vmul.f32 %v892_v57, %v48_v49  ;;  %901 = vrsqrt.f32 %v1236_v60  ;;  %vm197_vm13 = vcmp.eq.f32.partialorder %v1236_v60, inf  ;;  %vm199_vm14 = vcmp.eq.f32.partialorder %v1236_v60, 0.0 }
  0xa0   :  { %v177_v3 = vsel %vm176_vm1, %v152_v48, %v175_v58  ;;  %903 = vrsqrt.f32 %v1238_v61  ;;  %v200_v25 = vand.u32 2147483648, %v1236_v60  ;;  %vm190_vm15 = vcmp.eq.f32.partialorder %v1238_v61, inf }
  0xa1   :  { %v894_v4 = vpop.eup %893  ;;  %v180_v5 = vsel %vm178_vm2, %v179_v54, %v177_v3  ;;  %v73_v7 = vsel %vm72_vm3, %v48_v49, %v71_v62  ;;  %vm192_vm1 = vcmp.eq.f32.partialorder %v1238_v61, 0.0  ;;  %v193_v44 = vand.u32 2147483648, %v1238_v61 }
  0xa2   :  { %v896_v11 = vpop.eup %895  ;;  %v230_v12 = vadd.f32 1e-07, %v180_v5  ;;  %v76_v13 = vsel %vm74_vm4, %v75_v56, %v73_v7  ;;  %v182_v14 = vmul.f32 %v894_v4, %v155_v50  ;;  %v1251_v15 = vpop.xlane.xlu1 %62 }
  0xa3   :  { %v1253_v18 = vpop.xlane.xlu0 %59  ;;  %v126_v19 = vadd.f32 1e-07, %v76_v13  ;;  %v78_v20 = vmul.f32 %v896_v11, %v51_v51  ;;  %905 = vrsqrt.f32 %v1251_v15  ;;  %vm107_vm2 = vcmp.eq.f32.partialorder %v1251_v15, inf }
  0xa4   :  { %v184_v24 = vsel %vm183_vm5, %v155_v50, %v182_v14  ;;  %907 = vrcp.f32 %v230_v12  ;;  %vm109_vm3 = vcmp.eq.f32.partialorder %v1251_v15, 0.0  ;;  %v110_v57 = vand.u32 2147483648, %v1251_v15 }
  0xa5   :  { %v898_v26 = vpop.eup %897  ;;  %v187_v27 = vsel %vm185_vm6, %v186_v59, %v184_v24  ;;  %v80_v30 = vsel %vm79_vm7, %v51_v51, %v78_v20  ;;  %909 = vrsqrt.f32 %v1253_v18  ;;  %vm100_vm4 = vcmp.eq.f32.partialorder %v1253_v18, inf }
  0xa6   :  { %v900_v31 = vpop.eup %899  ;;  %v231_v32 = vadd.f32 1e-07, %v187_v27  ;;  %v83_v33 = vsel %vm81_vm8, %v82_v63, %v80_v30  ;;  %v92_v36 = vmul.f32 %v898_v26, %v1230_v52  ;;  %v1267_v37 = vpop.xlane.xlu1 %166  ;;  %911 = vrcp.f32 %v126_v19 }
  0xa7   :  { %v1269_v38 = vpop.xlane.xlu0 %163  ;;  %v127_v39 = vadd.f32 1e-07, %v83_v33  ;;  %v85_v42 = vmul.f32 %v900_v31, %v1232_v53  ;;  %vm102_vm5 = vcmp.eq.f32.partialorder %v1253_v18, 0.0  ;;  %v103_v63 = vand.u32 2147483648, %v1253_v18 }
  0xa8   :  { %913 = vrcp.f32 %v231_v32  ;;  %v94_v43 = vsel %vm93_vm9, %v1230_v52, %v92_v36  ;;  %vm211_vm6 = vcmp.eq.f32.partialorder %v1267_v37, inf  ;;  %vm213_vm7 = vcmp.eq.f32.partialorder %v1267_v37, 0.0 }
  0xa9   :  { %v902_v45 = vpop.eup %901  ;;  %915 = vrcp.f32 %v127_v39  ;;  %v97_v46 = vsel %vm95_vm10, %v96_v10, %v94_v43  ;;  %v87_v47 = vsel %vm86_vm11, %v1232_v53, %v85_v42  ;;  %v214_v12 = vand.u32 2147483648, %v1267_v37 }
  0xaa   :  { %v904_v48 = vpop.eup %903  ;;  %v129_v49 = vadd.f32 1e-07, %v97_v46  ;;  %v90_v50 = vsel %vm88_vm12, %v89_v21, %v87_v47  ;;  %v196_v51 = vmul.f32 %v902_v45, %v1236_v60  ;;  %917 = vrsqrt.f32 %v1267_v37  ;;  %v1288_v54 = vpop.xlane.xlu1 %68 }
  0xab   :  { %v1290_v55 = vpop.xlane.xlu0 %65  ;;  %v128_v52 = vadd.f32 1e-07, %v90_v50  ;;  %v189_v56 = vmul.f32 %v904_v48, %v1238_v61  ;;  %919 = vrsqrt.f32 %v1269_v38  ;;  %vm204_vm8 = vcmp.eq.f32.partialorder %v1269_v38, inf }
  0xac   :  { %921 = vrcp.f32 %v129_v49  ;;  %v198_v53 = vsel %vm197_vm13, %v1236_v60, %v196_v51  ;;  %vm206_vm9 = vcmp.eq.f32.partialorder %v1269_v38, 0.0  ;;  %vm121_vm10 = vcmp.eq.f32.partialorder %v1288_v54, inf }
  0xad   :  { %v906_v58 = vpop.eup %905  ;;  %923 = vrcp.f32 %v128_v52  ;;  %v201_v59 = vsel %vm199_vm14, %v200_v25, %v198_v53  ;;  %v191_v62 = vsel %vm190_vm15, %v1238_v61, %v189_v56  ;;  %v207_v25 = vand.u32 2147483648, %v1269_v38 }
  0xae   :  { %v233_v3 = vadd.f32 1e-07, %v201_v59  ;;  %v194_v4 = vsel %vm192_vm1, %v193_v44, %v191_v62  ;;  %v106_v5 = vmul.f32 %v906_v58, %v1251_v15  ;;  %925 = vrsqrt.f32 %v1288_v54  ;;  %v908_v7 = vpop.eup %907  ;;  %v1313_v60 = vpop.xlane.xlu1 %172 }
  0xaf   :  { %v232_v10 = vadd.f32 1e-07, %v194_v4  ;;  %927 = vrsqrt.f32 %v1290_v55  ;;  %v910_v11 = vpop.eup %909  ;;  %v1320_v13 = vpop.xlane.xlu0 %169  ;;  %vm123_vm11 = vcmp.eq.f32.partialorder %v1288_v54, 0.0  ;;  %vm114_vm12 = vcmp.eq.f32.partialorder %v1290_v55, inf }
  0xb0   :  { %929 = vrcp.f32 %v233_v3  ;;  %v108_v61 = vsel %vm107_vm2, %v1251_v15, %v106_v5  ;;  %v912_v14 = vpop.eup %911  ;;  %v99_v20 = vmul.f32 %v910_v11, %v1253_v18  ;;  %v124_v15 = vand.u32 2147483648, %v1288_v54 }
  0xb1   :  { %931 = vrcp.f32 %v232_v10  ;;  %v111_v19 = vsel %vm109_vm3, %v110_v57, %v108_v61  ;;  %vm116_vm13 = vcmp.eq.f32.partialorder %v1290_v55, 0.0  ;;  %v117_v32 = vand.u32 2147483648, %v1290_v55 }
  0xb2   :  { %v914_v21 = vpop.eup %913  ;;  %v131_v24 = vadd.f32 1e-07, %v111_v19  ;;  %933 = vrsqrt.f32 %v1313_v60  ;;  %v101_v27 = vsel %vm100_vm4, %v1253_v18, %v99_v20  ;;  %v254_v42 = vmul.f32 %v908_v7, %v1105_v0 }
  0xb3   :  { %v916_v26 = vpop.eup %915  ;;  %935 = vrsqrt.f32 %v1320_v13  ;;  %v104_v31 = vsel %vm102_vm5, %v103_v63, %v101_v27  ;;  %v255_v43 = vmul.f32 %v914_v21, %v1115_v2  ;;  %vm225_vm14 = vcmp.eq.f32.partialorder %v1313_v60, inf }
  0xb4   :  { %v918_v30 = vpop.eup %917  ;;  %937 = vrcp.f32 %v131_v24  ;;  %v130_v36 = vadd.f32 1e-07, %v104_v31  ;;  %v246_v18 = vmul.f32 %v912_v14, %v1110_v1  ;;  %v247_v46 = vmul.f32 %v916_v26, %v1126_v6 }
  0xb5   :  { %v920_v33 = vpop.eup %919  ;;  %v210_v39 = vmul.f32 %v918_v30, %v1267_v37  ;;  %vm227_vm15 = vcmp.eq.f32.partialorder %v1313_v60, 0.0  ;;  %v266_v0 = vpack.c.bf16 %v255_v43, %v254_v42  ;;  %v228_v3 = vand.u32 2147483648, %v1313_v60 }
  0xb6   :  { %v922_v44 = vpop.eup %921  ;;  %v203_v45 = vmul.f32 %v920_v33, %v1269_v38  ;;  %939 = vrcp.f32 %v130_v36  ;;  %v262_v6 = vpack.c.bf16 %v247_v46, %v246_v18  ;;  %vm218_vm1 = vcmp.eq.f32.partialorder %v1320_v13, inf }
  0xb7   :  { %v924_v47 = vpop.eup %923  ;;  %v212_v48 = vsel %vm211_vm6, %v1267_v37, %v210_v39  ;;  %v249_v2 = vmul.f32 %v922_v44, %v1133_v8  ;;  %875 = vmatprep.subr.msk.bf16.mxu0 %vm45_vm0, %v266_v0  ;;  %867 = vmatprep.mubr.msk.bf16.mxu1 %vm45_vm0, %v266_v0  ;;  %v283_v8 = vsel %vm45_vm0, %v266_v0, 0  ;;  %vm220_vm2 = vcmp.eq.f32.partialorder %v1320_v13, 0.0 }
  0xb8   :  { %v926_v49 = vpop.eup %925  ;;  %v215_v50 = vsel %vm213_vm7, %v214_v12, %v212_v48  ;;  %v205_v1 = vsel %vm204_vm8, %v1269_v38, %v203_v45  ;;  %v248_v51 = vmul.f32 %v924_v47, %v1138_v9  ;;  %851 = vmatprep.mubr.msk.bf16.mxu0 %vm45_vm0, %v262_v6  ;;  %879 = vmatprep.subr.msk.bf16.mxu1 %vm45_vm0, %v262_v6  ;;  %v271_v9 = vsel %vm45_vm0, %v262_v6, 0 }
  0xb9   :  { %v928_v52 = vpop.eup %927  ;;  %v235_v56 = vadd.f32 1e-07, %v215_v50  ;;  %v208_v57 = vsel %vm206_vm9, %v207_v25, %v205_v1  ;;  %v120_v53 = vmul.f32 %v926_v49, %v1288_v54  ;;  %844 = vmatpush3.bf16.xpose.msra.mxu0 %v283_v8  ;;  %860 = vmatpush3.bf16.xpose.msra.mxu1 %v271_v9  ;;  %v221_v24 = vand.u32 2147483648, %v1320_v13 }
  0xba   :  { %v930_v37 = vpop.eup %929  ;;  %v234_v58 = vadd.f32 1e-07, %v208_v57  ;;  %v113_v59 = vmul.f32 %v928_v52, %v1290_v55  ;;  %v1368_v38 = vpack.c.bf16 %v249_v2, %v248_v51  ;;  %vm462_vm8 = vcmask 523264  }
  0xbb   :  { %v932_v62 = vpop.eup %931  ;;  %941 = vrcp.f32 %v235_v56  ;;  %v122_v63 = vsel %vm121_vm10, %v1288_v54, %v120_v53  ;;  %v257_v4 = vmul.f32 %v930_v37, %v1151_v16  ;;  %v444_v56 = vstv %s1830_s0  ;;  %s1073_s0 = smov [#allocation5]  }
  0xbc   :  { %v934_v5 = vpop.eup %933  ;;  %943 = vrcp.f32 %v234_v58  ;;  %v125_v7 = vsel %vm123_vm11, %v124_v15, %v122_v63  ;;  %v115_v10 = vsel %vm114_vm12, %v1290_v55, %v113_v59  ;;  %880 = vmatprep.subr.msk.bf16.mxu1 %vm45_vm0, %v1368_v38  ;;  %v256_v11 = vmul.f32 %v932_v62, %v1156_v17  ;;  %s804_s24 = sshll.u32 %s1073_s0, 4  ;;  %s805_s24 = int_to_ptr.vmem [resolvable:$true] %s804_s24 }
  0xbd   :  { %v936_v61 = vpop.eup %935  ;;  %v133_v12 = vadd.f32 1e-07, %v125_v7  ;;  %v118_v14 = vsel %vm116_vm13, %v117_v32, %v115_v10  ;;  %v224_v16 = vmul.f32 %v934_v5, %v1313_v60  ;;  %v274_v33 = vsel %vm45_vm0, %v1368_v38, 0  ;;  %s1025_s25 = scalar_lea.vmem %s805_s24, 1024  ;;  %p1030_p1 = scmp.lt.s32.totalorder %s805_s24, %s805_s24 }
  0xbe   :  { %v938_v54 = vpop.eup %937  ;;  %v132_v19 = vadd.f32 1e-07, %v118_v14  ;;  %v217_v20 = vmul.f32 %v936_v61, %v1320_v13  ;;  %v267_v21 = vpack.c.bf16 %v257_v4, %v256_v11  ;;  %v1448_v58 = vstv %s443_s21  ;;  %p1026_p0 = scmp.ne.s32.totalorder %s805_s24, %s1025_s25  ;;  %p1031_p2 = scmp.lt.s32.totalorder %s1025_s25, %s1025_s25 }
  0xbf   :  { %945 = vrcp.f32 %v133_v12  ;;  %v226_v17 = vsel %vm225_vm14, %v1313_v60, %v224_v16  ;;  %v251_v55 = vmul.f32 %v938_v54, %v1167_v22 }
  0xc0   :  { %947 = vrcp.f32 %v132_v19  ;;  %v229_v25 = vsel %vm227_vm15, %v228_v3, %v226_v17  ;;  %v219_v26 = vsel %vm218_vm1, %v1320_v13, %v217_v20  ;;  %876 = vmatprep.subr.msk.bf16.mxu0 %vm45_vm0, %v267_v21  ;;  %v286_v27 = vsel %vm45_vm0, %v267_v21, 0  ;;  %v940_v15 = vpop.eup %939  ;;  %p1032_p3 = por %p1031_p2, %p1030_p1 }
  0xc1   :  { %v237_v30 = vadd.f32 1e-07, %v229_v25  ;;  %v222_v31 = vsel %vm220_vm2, %v221_v24, %v219_v26  ;;  %v250_v36 = vmul.f32 %v940_v15, %v1172_v23  ;;  %846 = vmatpush3.bf16.xpose.msra.mxu0 %v286_v27  ;;  %862 = vmatpush3.bf16.xpose.msra.mxu1 %v274_v33 }
  0xc2   :  { %v236_v32 = vadd.f32 1e-07, %v222_v31  ;;  %p1033_p4 = pnand %p1032_p3, %p1026_p0 }
  0xc3   :  { %949 = vrcp.f32 %v237_v30  ;;  %v264_v22 = vpack.c.bf16 %v251_v55, %v250_v36 }
  0xc4   :  { %951 = vrcp.f32 %v236_v32 }
  0xc5   :  { %v942_v60 = vpop.eup %941  ;;  %881 = vmatprep.subr.msk.bf16.mxu1 %vm45_vm0, %v264_v22  ;;  %v277_v18 = vsel %vm45_vm0, %v264_v22, 0 }
  0xc6   :  { %v944_v13 = vpop.eup %943  ;;  %v259_v39 = vmul.f32 %v942_v60, %v1183_v28 }
  0xc7   :  { %v258_v42 = vmul.f32 %v944_v13, %v1188_v29 }
  0xc9   :  { %v946_v43 = vpop.eup %945  ;;  %v268_v44 = vpack.c.bf16 %v259_v39, %v258_v42  ;;  %864 = vmatpush3.bf16.xpose.msra.mxu1 %v277_v18 }
  0xca   :  { %v948_v45 = vpop.eup %947  ;;  %v253_v23 = vmul.f32 %v946_v43, %v1199_v34 }
  0xcb   :  { %877 = vmatprep.subr.msk.bf16.mxu0 %vm45_vm0, %v268_v44  ;;  %v289_v46 = vsel %vm45_vm0, %v268_v44, 0  ;;  %v252_v47 = vmul.f32 %v948_v45, %v1204_v35  ;;  %v424_v35 = vlaneseq }
  0xcc   :  { %848 = vmatpush3.bf16.xpose.msra.mxu0 %v289_v46 }
  0xcd   :  { %v950_v48 = vpop.eup %949  ;;  %v265_v0 = vpack.c.bf16 %v253_v23, %v252_v47 }
  0xce   :  { %v952_v28 = vpop.eup %951  ;;  %v261_v29 = vmul.f32 %v950_v48, %v1215_v40  ;;  %v425_v40 = vshrl.u32 %v424_v35, 7 }
  0xcf   :  { %882 = vmatprep.subr.msk.bf16.mxu1 %vm45_vm0, %v265_v0  ;;  %v260_v2 = vmul.f32 %v952_v28, %v1220_v41  ;;  %v280_v34 = vsel %vm45_vm0, %v265_v0, 0  ;;  %v1423_v41 = vand.u32 127, %v424_v35 }
  0xd0   :  { %v428_v1 = vadd.s32 24, %v425_v40  ;;  %v426_v6 = vadd.s32 8, %v425_v40  ;;  %v1427_v51 = vadd.s32 56, %v425_v40  ;;  %v1429_v52 = vadd.s32 40, %v425_v40 }
  0xd1   :  { %v269_v49 = vpack.c.bf16 %v261_v29, %v260_v2  ;;  %866 = vmatpush3.bf16.xpose.msra.mxu1 %v280_v34  ;;  %v427_v57 = vadd.s32 16, %v425_v40  ;;  %vm435_vm6 = vcmp.eq.s32.totalorder %v425_v40, %v1423_v41  ;;  %v431_v63 = vadd.s32 48, %v425_v40 }
  0xd2   :  { %vm438_vm3 = vcmp.eq.s32.totalorder %v428_v1, %v1423_v41  ;;  %vm436_vm4 = vcmp.eq.s32.totalorder %v426_v6, %v1423_v41  ;;  %vm442_vm5 = vcmp.eq.s32.totalorder %v1427_v51, %v1423_v41  ;;  %v429_v7 = vadd.s32 32, %v425_v40 }
  0xd3   :  { %878 = vmatprep.subr.msk.bf16.mxu0 %vm45_vm0, %v269_v49  ;;  %v292_v50 = vsel %vm45_vm0, %v269_v49, 0  ;;  %vm437_vm7 = vcmp.eq.s32.totalorder %v427_v57, %v1423_v41  ;;  %vm441_vm9 = vcmp.eq.s32.totalorder %v431_v63, %v1423_v41 }
  0xd4   :  { %850 = vmatpush3.bf16.xpose.msra.mxu0 %v292_v50  ;;  %vm439_vm10 = vcmp.eq.s32.totalorder %v429_v7, %v1423_v41 }
  0xd8   :  { %868 = vmatmul.mubr.msk.bf16.vlgmr.msra.gmra.mrb[0].mxu1 %vm45_vm0, %v267_v21 }
  0xd9   :  { %871 = vmatprep.mubr.msk.bf16.mxu1 %vm45_vm0, %v268_v44 }
  0xdb   :  { %852 = vmatmul.mubr.msk.bf16.vlgmr.msra.gmra.mrb[0].mxu0 %vm45_vm0, %v1368_v38 }
  0xdc   :  { %855 = vmatprep.mubr.msk.bf16.mxu0 %vm45_vm0, %v264_v22 }
  0xe0   :  { %872 = vmatmul.mubr.msk.bf16.gmra.mrb[4].mxu1 %vm45_vm0, %v269_v49 }
  0xe3   :  { %856 = vmatmul.mubr.msk.bf16.gmra.mrb[4].mxu0 %vm45_vm0, %v265_v0  ;;  %vm440_vm0 = vcmp.eq.s32.totalorder %v1429_v52, %v1423_v41 }
 0x1ab   :  { %v1441_v53 = vpop.f32.mrb[0].mxu1 }
 0x1ac   :  { %v1445_v37 = vpop.f32.mrb[1].mxu1  ;;  %v447_v59 = vmul.f32 %v1441_v53, %v444_v56  ;;  %v606_v20 = vsel %vm462_vm8, %v1441_v53, -inf }
 0x1ad   :  { %v445_v38 = vmul.f32 %v444_v56, %v1445_v37  ;;  %v1454_v62 = vpop.f32.mrb[2].mxu1  ;;  %v604_v21 = vsel %vm462_vm8, %v1445_v37, -inf }
 0x1ae   :  { %v1443_v8 = vpop.f32.mrb[0].mxu0  ;;  %v448_v4 = vmul.f32 %v1454_v62, %v444_v56  ;;  %v1459_v5 = vpop.f32.mrb[3].mxu1  ;;  %v1476_v16 = vsel %vm437_vm7, %v1448_v58, %v447_v59  ;;  %v607_v55 = vsel %vm462_vm8, %v1454_v62, -inf }
 0x1af   :  { %v1451_v9 = vpop.f32.mrb[1].mxu0  ;;  %v446_v11 = vmul.f32 %v444_v56, %v1459_v5  ;;  %v1466_v61 = vsel %vm435_vm6, %v1448_v58, %v445_v38  ;;  %v521_v19 = vsel %vm462_vm8, %v1443_v8, -inf  ;;  %v605_v25 = vsel %vm462_vm8, %v1459_v5, -inf }
 0x1b0   :  { %v1456_v3 = vpop.f32.mrb[2].mxu0  ;;  %v463_v12 = vsel %vm462_vm8, %v1466_v61, -inf  ;;  %v1473_v14 = vsel %vm438_vm3, %v1448_v58, %v448_v4  ;;  %v519_v17 = vsel %vm462_vm8, %v1451_v9, -inf  ;;  %v469_v33 = vsel %vm462_vm8, %v1476_v16, -inf }
 0x1b1   :  { %v1462_v10 = vpop.f32.mrb[3].mxu0  ;;  %464 = vmax.xlane.f32.xlu1 %v463_v12  ;;  %v1482_v54 = vsel %vm436_vm4, %v1448_v58, %v446_v11  ;;  %v522_v24 = vsel %vm462_vm8, %v1456_v3, -inf }
 0x1b2   :  { %v520_v27 = vsel %vm462_vm8, %v1462_v10, -inf }
 0x1b3   :  { %v1499_v26 = vpop.f32.mrb[4].mxu1 }
 0x1b4   :  { %v451_v30 = vmul.f32 %v1499_v26, %v444_v56  ;;  %v612_v31 = vsel %vm462_vm8, %v1499_v26, -inf  ;;  %v1506_v32 = vpop.f32.mrb[5].mxu1 }
 0x1b5   :  { %v613_v22 = vmax.f32 %v606_v20, %v612_v31  ;;  %v449_v13 = vmul.f32 %v444_v56, %v1506_v32  ;;  %v608_v39 = vsel %vm462_vm8, %v1506_v32, -inf  ;;  %470 = vmax.xlane.f32.xlu1 %v469_v33  ;;  %v1514_v42 = vpop.f32.mrb[6].mxu1 }
 0x1b6   :  { %v857_v15 = vpop.f32.mrb[4].mxu0  ;;  %v609_v45 = vmax.f32 %v604_v21, %v608_v39  ;;  %v452_v23 = vmul.f32 %v1514_v42, %v444_v56  ;;  %v412_v46 = vpop.f32.mrb[7].mxu1  ;;  %v614_v0 = vsel %vm462_vm8, %v1514_v42, -inf }
 0x1b7   :  { %v527_v36 = vsel %vm462_vm8, %v857_v15, -inf  ;;  %v344_v60 = vpop.f32.mrb[5].mxu0  ;;  %v450_v29 = vmul.f32 %v444_v56, %v412_v46  ;;  %v615_v49 = vmax.f32 %v607_v55, %v614_v0  ;;  %v610_v50 = vsel %vm462_vm8, %v412_v46, -inf }
 0x1b8   :  { %v528_v43 = vmax.f32 %v521_v19, %v527_v36  ;;  %v523_v44 = vsel %vm462_vm8, %v344_v60, -inf  ;;  %v858_v18 = vpop.f32.mrb[6].mxu0  ;;  %v611_v40 = vmax.f32 %v605_v25, %v610_v50  ;;  %v1526_v1 = vsel %vm439_vm10, %v1448_v58, %v449_v13 }
 0x1b9   :  { %v524_v47 = vmax.f32 %v519_v17, %v523_v44  ;;  %v529_v48 = vsel %vm462_vm8, %v858_v18, -inf  ;;  %v347_v28 = vpop.f32.mrb[7].mxu0  ;;  %v617_v57 = vmax.f32 %v613_v22, %v615_v49  ;;  %v475_v59 = vsel %vm462_vm8, %v1526_v1, -inf }
 0x1ba   :  { %v530_v2 = vmax.f32 %v522_v24, %v529_v48  ;;  %v525_v34 = vsel %vm462_vm8, %v347_v28, -inf  ;;  %v1533_v56 = vsel %vm441_vm9, %v1448_v58, %v451_v30  ;;  %v616_v4 = vmax.f32 %v609_v45, %v611_v40  ;;  %476 = vmax.xlane.f32.xlu1 %v475_v59 }
 0x1bb   :  { %v526_v35 = vmax.f32 %v520_v27, %v525_v34  ;;  %v1539_v7 = vsel %vm440_vm0, %v1448_v58, %v450_v29  ;;  %v1545_v11 = vsel %vm442_vm5, %v1448_v58, %v452_v23  ;;  %v481_v63 = vsel %vm462_vm8, %v1533_v56, -inf }
 0x1bc   :  { %v532_v6 = vmax.f32 %v528_v43, %v530_v2  ;;  %v618_v19 = vmax.f32 %v616_v4, %v617_v57 }
 0x1bd   :  { %v531_v38 = vmax.f32 %v524_v47, %v526_v35 }
 0x1be   :  { %v619_v21 = vrot.slane %v618_v19, 4  ;;  %482 = vmax.xlane.f32.xlu1 %v481_v63 }
 0x1bf   :  { %v533_v12 = vmax.f32 %v531_v38, %v532_v6 }
 0x1c0   :  { %v620_v24 = vmax.f32 %v618_v19, %v619_v21 }
 0x1c1   :  { %v534_v20 = vrot.slane %v533_v12, 4 }
 0x1c2   :  { %v621_v52 = vrot.slane %v620_v24, 2 }
 0x1c3   :  { %v535_v17 = vmax.f32 %v533_v12, %v534_v20 }
 0x1c4   :  { %v622_v27 = vmax.f32 %v620_v24, %v621_v52 }
 0x1c5   :  { %v536_v55 = vrot.slane %v535_v17, 2 }
 0x1c6   :  { %v623_v31 = vrot.slane %v622_v27, 1 }
 0x1c7   :  { %v537_v25 = vmax.f32 %v535_v17, %v536_v55 }
 0x1c8   :  { %v624_v41 = vmax.f32 %v622_v27, %v623_v31 }
 0x1c9   :  { %v538_v30 = vrot.slane %v537_v25, 1 }
 0x1ca   :  { %v1582_v23 = vsub.f32 %v1441_v53, %v624_v41  ;;  %v1585_v47 = vsub.f32 %v1454_v62, %v624_v41  ;;  %v1590_v48 = vsub.f32 %v412_v46, %v624_v41  ;;  %v1594_v0 = vsub.f32 %v1499_v26, %v624_v41 }
 0x1cb   :  { %v539_v33 = vmax.f32 %v537_v25, %v538_v30 }
 0x1cc   :  { %v637_v46 = vmul.f32 1.442695, %v1582_v23  ;;  %v639_v29 = vmul.f32 1.442695, %v1585_v47  ;;  %v643_v34 = vmul.f32 1.442695, %v1590_v48 }
 0x1cd   :  { %v1550_v51 = vsub.f32 %v1451_v9, %v539_v33  ;;  %v1553_v58 = vsub.f32 %v1462_v10, %v539_v33  ;;  %v1556_v36 = vsub.f32 %v1443_v8, %v539_v33  ;;  %v1559_v22 = vsub.f32 %v1456_v3, %v539_v33 }
 0x1ce   :  { %v1561_v13 = vsub.f32 %v344_v60, %v539_v33  ;;  %v1563_v39 = vsub.f32 %v347_v28, %v539_v33  ;;  %v1565_v43 = vsub.f32 %v857_v15, %v539_v33  ;;  %v1567_v44 = vsub.f32 %v858_v18, %v539_v33 }
 0x1cf   :  { %v548_v9 = vmul.f32 1.442695, %v1550_v51  ;;  %v550_v45 = vmul.f32 1.442695, %v1553_v58  ;;  %v552_v10 = vmul.f32 1.442695, %v1556_v36  ;;  %v1573_v8 = vsub.f32 %v1445_v37, %v624_v41 }
 0x1d0   :  { %v554_v3 = vmul.f32 1.442695, %v1559_v22  ;;  %v1577_v60 = vsub.f32 %v1459_v5, %v624_v41  ;;  %v556_v15 = vmul.f32 1.442695, %v1561_v13  ;;  %v558_v18 = vmul.f32 1.442695, %v1563_v39 }
 0x1d1   :  { %953 = vpow2.f32 %v548_v9  ;;  %v1588_v37 = vsub.f32 %v1506_v32, %v624_v41  ;;  %v560_v5 = vmul.f32 1.442695, %v1565_v43  ;;  %v1597_v28 = vsub.f32 %v1514_v42, %v624_v41 }
 0x1d2   :  { %955 = vpow2.f32 %v550_v45  ;;  %v562_v53 = vmul.f32 1.442695, %v1567_v44  ;;  %v633_v62 = vmul.f32 1.442695, %v1573_v8  ;;  %v635_v32 = vmul.f32 1.442695, %v1577_v60 }
 0x1d3   :  { %957 = vpow2.f32 %v552_v10  ;;  %v641_v26 = vmul.f32 1.442695, %v1588_v37  ;;  %v645_v57 = vmul.f32 1.442695, %v1594_v0  ;;  %v647_v19 = vmul.f32 1.442695, %v1597_v28 }
 0x1d4   :  { %959 = vpow2.f32 %v554_v3 }
 0x1d5   :  { %961 = vpow2.f32 %v556_v15 }
 0x1d6   :  { %963 = vpow2.f32 %v558_v18 }
 0x1d7   :  { %965 = vpow2.f32 %v560_v5 }
 0x1d8   :  { %967 = vpow2.f32 %v562_v53 }
 0x1d9   :  { %969 = vpow2.f32 %v633_v62 }
 0x1da   :  { %971 = vpow2.f32 %v635_v32 }
 0x1db   :  { %v1605_v42 = vpop.eup %953  ;;  %973 = vpow2.f32 %v637_v46 }
 0x1dc   :  { %v1607_v2 = vpop.eup %955  ;;  %v564_v49 = vsel %vm462_vm8, %v1605_v42, 0.0  ;;  %975 = vpow2.f32 %v639_v29 }
 0x1dd   :  { %v1612_v50 = vpop.eup %957  ;;  %v565_v35 = vsel %vm462_vm8, %v1607_v2, 0.0  ;;  %977 = vpow2.f32 %v641_v26 }
 0x1de   :  { %v1616_v40 = vpop.eup %959  ;;  %v566_v6 = vadd.f32 %v565_v35, %v564_v49  ;;  %v567_v38 = vsel %vm462_vm8, %v1612_v50, 0.0  ;;  %979 = vpow2.f32 %v643_v34 }
 0x1df   :  { %v1619_v59 = vpop.eup %961  ;;  %v569_v20 = vsel %vm462_vm8, %v1616_v40, 0.0  ;;  %981 = vpow2.f32 %v645_v57 }
 0x1e0   :  { %v964_v4 = vpop.eup %963  ;;  %v568_v12 = vadd.f32 %v567_v38, %v566_v6  ;;  %v571_v55 = vsel %vm462_vm8, %v1619_v59, 0.0  ;;  %983 = vpow2.f32 %v647_v19 }
 0x1e1   :  { %v966_v63 = vpop.eup %965  ;;  %v573_v31 = vsel %vm462_vm8, %v964_v4, 0.0 }
 0x1e2   :  { %v968_v21 = vpop.eup %967  ;;  %v570_v17 = vadd.f32 %v569_v20, %v568_v12  ;;  %v575_v10 = vsel %vm462_vm8, %v966_v63, 0.0 }
 0x1e3   :  { %v1626_v24 = vpop.eup %969  ;;  %v577_v53 = vsel %vm462_vm8, %v968_v21, 0.0 }
 0x1e4   :  { %v1630_v52 = vpop.eup %971  ;;  %v572_v25 = vadd.f32 %v571_v55, %v570_v17  ;;  %v649_v27 = vsel %vm462_vm8, %v1626_v24, 0.0 }
 0x1e5   :  { %v1634_v30 = vpop.eup %973  ;;  %v650_v33 = vsel %vm462_vm8, %v1630_v52, 0.0 }
 0x1e6   :  { %v1639_v41 = vpop.eup %975  ;;  %v574_v9 = vadd.f32 %v573_v31, %v572_v25  ;;  %v651_v45 = vadd.f32 %v650_v33, %v649_v27  ;;  %v652_v3 = vsel %vm462_vm8, %v1634_v30, 0.0 }
 0x1e7   :  { %v978_v15 = vpop.eup %977  ;;  %v654_v62 = vsel %vm462_vm8, %v1639_v41, 0.0 }
 0x1e8   :  { %v576_v18 = vadd.f32 %v575_v10, %v574_v9  ;;  %v653_v5 = vadd.f32 %v652_v3, %v651_v45  ;;  %v980_v32 = vpop.eup %979  ;;  %v656_v26 = vsel %vm462_vm8, %v978_v15, 0.0 }
 0x1e9   :  { %v982_v49 = vpop.eup %981  ;;  %v658_v6 = vsel %vm462_vm8, %v980_v32, 0.0 }
 0x1ea   :  { %v578_v46 = vadd.f32 %v577_v53, %v576_v18  ;;  %v655_v29 = vadd.f32 %v654_v62, %v653_v5  ;;  %v984_v57 = vpop.eup %983  ;;  %v660_v19 = vsel %vm462_vm8, %v982_v49, 0.0 }
 0x1eb   :  { %v662_v55 = vsel %vm462_vm8, %v984_v57, 0.0 }
 0x1ec   :  { %v579_v34 = vrot.slane %v578_v46, 4  ;;  %v657_v35 = vadd.f32 %v656_v26, %v655_v29 }
 0x1ee   :  { %v580_v38 = vadd.f32 %v579_v34, %v578_v46  ;;  %v659_v12 = vadd.f32 %v658_v6, %v657_v35 }
 0x1f0   :  { %v581_v20 = vrot.slane %v580_v38, 2  ;;  %v661_v17 = vadd.f32 %v660_v19, %v659_v12 }
 0x1f2   :  { %v582_v25 = vadd.f32 %v581_v20, %v580_v38  ;;  %v663_v27 = vadd.f32 %v662_v55, %v661_v17 }
 0x1f4   :  { %v583_v31 = vrot.slane %v582_v25, 1  ;;  %v664_v33 = vrot.slane %v663_v27, 4 }
 0x1f6   :  { %v584_v9 = vadd.f32 %v583_v31, %v582_v25  ;;  %v665_v45 = vadd.f32 %v664_v33, %v663_v27 }
 0x1f8   :  { %985 = vrcp.f32 %v584_v9  ;;  %v666_v10 = vrot.slane %v665_v45, 2 }
 0x1f9   :  { %987 = vlog2.f32 %v584_v9 }
 0x1fa   :  { %v667_v3 = vadd.f32 %v666_v10, %v665_v45 }
 0x1fc   :  { %v668_v18 = vrot.slane %v667_v3, 1 }
 0x1fe   :  { %v669_v5 = vadd.f32 %v668_v18, %v667_v3 }
 0x200   :  { %989 = vrcp.f32 %v669_v5 }
 0x201   :  { %991 = vlog2.f32 %v669_v5 }
 0x202   :  { %v986_v53 = vpop.eup %985 }
 0x203   :  { %v988_v62 = vpop.eup %987  ;;  %v1651_v46 = vmul.f32 %v986_v53, %v964_v4  ;;  %v1654_v29 = vmul.f32 %v986_v53, %v1605_v42  ;;  %v1657_v26 = vmul.f32 %v986_v53, %v1607_v2  ;;  %v1660_v34 = vmul.f32 %v986_v53, %v1612_v50 }
 0x204   :  { %v1662_v35 = vmul.f32 0.6931472, %v988_v62  ;;  %v1665_v6 = vmul.f32 %v986_v53, %v1616_v40  ;;  %v1668_v38 = vmul.f32 %v986_v53, %v1619_v59  ;;  %v1670_v12 = vmul.f32 %v986_v53, %v966_v63 }
 0x205   :  { %v1672_v4 = vmul.f32 %v986_v53, %v968_v21 }
 0x206   :  { %v601_v42 = vsub.f32 %v1563_v39, %v1662_v35  ;;  %v596_v2 = vsub.f32 %v1550_v51, %v1662_v35  ;;  %v597_v50 = vsub.f32 %v1553_v58, %v1662_v35  ;;  %v598_v40 = vsub.f32 %v1556_v36, %v1662_v35 }
 0x207   :  { %v599_v59 = vsub.f32 %v1559_v22, %v1662_v35 }
 0x20a   :  { %v990_v19 = vpop.eup %989 }
 0x20b   :  { %v992_v51 = vpop.eup %991  ;;  %v676_v20 = vmul.f32 %v990_v19, %v980_v32  ;;  %v1691_v17 = vmul.f32 %v990_v19, %v1626_v24  ;;  %v1694_v55 = vmul.f32 %v990_v19, %v1630_v52  ;;  %v1697_v25 = vmul.f32 %v990_v19, %v1634_v30 }
 0x20c   :  { %v1699_v27 = vmul.f32 0.6931472, %v992_v51  ;;  %v1702_v31 = vmul.f32 %v990_v19, %v1639_v41  ;;  %v1704_v33 = vmul.f32 %v990_v19, %v978_v15  ;;  %v1706_v9 = vmul.f32 %v990_v19, %v982_v49 }
 0x20d   :  { %v694_v32 = vadd.f32 %v676_v20, %v1651_v46  ;;  %v1709_v45 = vmul.f32 %v990_v19, %v984_v57  ;;  %v689_v24 = vadd.f32 %v1691_v17, %v1654_v29  ;;  %v690_v52 = vadd.f32 %v1694_v55, %v1657_v26 }
 0x20e   :  { %v686_v30 = vsub.f32 %v1590_v48, %v1699_v27  ;;  %v681_v41 = vsub.f32 %v1573_v8, %v1699_v27  ;;  %v682_v15 = vsub.f32 %v1577_v60, %v1699_v27  ;;  %v683_v49 = vsub.f32 %v1582_v23, %v1699_v27 }
 0x20f   :  { %v702_v57 = vmul.f32 0.5, %v694_v32  ;;  %v684_v10 = vsub.f32 %v1585_v47, %v1699_v27  ;;  %v685_v3 = vsub.f32 %v1588_v37, %v1699_v27  ;;  %v687_v18 = vsub.f32 %v1594_v0, %v1699_v27 }
 0x210   :  { %v688_v48 = vsub.f32 %v1597_v28, %v1699_v27  ;;  %v691_v8 = vadd.f32 %v1697_v25, %v1660_v34  ;;  %v692_v60 = vadd.f32 %v1702_v31, %v1665_v6  ;;  %v693_v23 = vadd.f32 %v1704_v33, %v1668_v38 }
 0x211   :  { %993 = vlog2.f32 %v702_v57  ;;  %v695_v47 = vadd.f32 %v1706_v9, %v1670_v12  ;;  %v696_v37 = vadd.f32 %v1709_v45, %v1672_v4  ;;  %v697_v0 = vmul.f32 0.5, %v689_v24 }
 0x212   :  { %v698_v5 = vmul.f32 0.5, %v690_v52  ;;  %v699_v53 = vmul.f32 0.5, %v691_v8  ;;  %v700_v28 = vmul.f32 0.5, %v692_v60  ;;  %v701_v62 = vmul.f32 0.5, %v693_v23 }
 0x213   :  { %995 = vlog2.f32 %v697_v0  ;;  %v703_v19 = vmul.f32 0.5, %v695_v47  ;;  %v704_v51 = vmul.f32 0.5, %v696_v37 }
 0x214   :  { %997 = vlog2.f32 %v698_v5 }
 0x215   :  { %999 = vlog2.f32 %v699_v53 }
 0x216   :  { %1001 = vlog2.f32 %v700_v28 }
 0x217   :  { %1003 = vlog2.f32 %v701_v62 }
 0x218   :  { %1005 = vlog2.f32 %v703_v19 }
 0x219   :  { %1007 = vlog2.f32 %v704_v51 }
 0x21b   :  { %v994_v27 = vpop.eup %993 }
 0x21c   :  { %v716_v32 = vmul.f32 0.6931472, %v994_v27 }
 0x21d   :  { %v996_v57 = vpop.eup %995 }
 0x21e   :  { %v998_v39 = vpop.eup %997  ;;  %v726_v21 = vsub.f32 %v601_v42, %v716_v32  ;;  %v742_v63 = vsub.f32 %v686_v30, %v716_v32  ;;  %v706_v24 = vmul.f32 0.6931472, %v996_v57 }
 0x21f   :  { %v1000_v52 = vpop.eup %999  ;;  %v708_v8 = vmul.f32 0.6931472, %v998_v39 }
 0x220   :  { %v1002_v60 = vpop.eup %1001  ;;  %v750_v23 = vmul.f32 %v742_v63, %v676_v20  ;;  %v710_v0 = vmul.f32 0.6931472, %v1000_v52  ;;  %v721_v47 = vsub.f32 %v596_v2, %v706_v24  ;;  %v734_v37 = vmul.f32 %v726_v21, %v1651_v46 }
 0x221   :  { %v1004_v5 = vpop.eup %1003  ;;  %v712_v53 = vmul.f32 0.6931472, %v1002_v60  ;;  %v722_v28 = vsub.f32 %v597_v50, %v708_v8  ;;  %v737_v62 = vsub.f32 %v681_v41, %v706_v24  ;;  %v738_v19 = vsub.f32 %v682_v15, %v708_v8 }
 0x222   :  { %v1006_v51 = vpop.eup %1005  ;;  %v714_v42 = vmul.f32 0.6931472, %v1004_v5  ;;  %v723_v39 = vsub.f32 %v598_v40, %v710_v0  ;;  %v729_v63 = vmul.f32 %v721_v47, %v1654_v29  ;;  %v739_v20 = vsub.f32 %v683_v49, %v710_v0 }
 0x223   :  { %v1008_v2 = vpop.eup %1007  ;;  %v718_v30 = vmul.f32 0.6931472, %v1006_v51  ;;  %v724_v46 = vsub.f32 %v599_v59, %v712_v53  ;;  %v730_v58 = vmul.f32 %v722_v28, %v1657_v26  ;;  %v740_v50 = vsub.f32 %v684_v10, %v712_v53 }
 0x224   :  { %v720_v21 = vmul.f32 0.6931472, %v1008_v2  ;;  %v1835_v41 = vsub.f32 %v1561_v13, %v1662_v35  ;;  %v731_v36 = vmul.f32 %v723_v39, %v1660_v34  ;;  %v741_v40 = vsub.f32 %v685_v3, %v714_v42 }
 0x225   :  { %v1836_v29 = vsub.f32 %v1565_v43, %v1662_v35  ;;  %v732_v27 = vmul.f32 %v724_v46, %v1665_v6  ;;  %v743_v32 = vsub.f32 %v687_v18, %v718_v30  ;;  %v745_v22 = vmul.f32 %v737_v62, %v1691_v17 }
 0x226   :  { %v725_v15 = vsub.f32 %v1835_v41, %v714_v42  ;;  %v1837_v26 = vsub.f32 %v1567_v44, %v1662_v35  ;;  %v744_v13 = vsub.f32 %v688_v48, %v720_v21  ;;  %v746_v57 = vmul.f32 %v738_v19, %v1694_v55 }
 0x227   :  { %v727_v49 = vsub.f32 %v1836_v29, %v718_v30  ;;  %v747_v3 = vmul.f32 %v739_v20, %v1697_v25  ;;  %v748_v43 = vmul.f32 %v740_v50, %v1702_v31  ;;  %v749_v6 = vmul.f32 %v741_v40, %v1704_v33 }
 0x228   :  { %v728_v59 = vsub.f32 %v1837_v26, %v720_v21  ;;  %v733_v10 = vmul.f32 %v725_v15, %v1668_v38  ;;  %v751_v17 = vmul.f32 %v743_v32, %v1706_v9  ;;  %v752_v44 = vmul.f32 %v744_v13, %v1709_v45 }
 0x229   :  { %v735_v34 = vmul.f32 %v727_v49, %v1670_v12  ;;  %v753_v35 = vadd.f32 %v745_v22, %v729_v63  ;;  %v754_v24 = vadd.f32 %v746_v57, %v730_v58  ;;  %v755_v38 = vadd.f32 %v747_v3, %v731_v36 }
 0x22a   :  { %v736_v18 = vmul.f32 %v728_v59, %v1672_v4  ;;  %v756_v48 = vadd.f32 %v748_v43, %v732_v27  ;;  %v757_v52 = vadd.f32 %v749_v6, %v733_v10  ;;  %v758_v55 = vadd.f32 %v750_v23, %v734_v37 }
 0x22b   :  { %v759_v8 = vadd.f32 %v751_v17, %v735_v34  ;;  %v761_v25 = vsel %vm462_vm8, %v753_v35, 0.0  ;;  %v762_v31 = vsel %vm462_vm8, %v754_v24, 0.0  ;;  %v764_v33 = vsel %vm462_vm8, %v755_v38, 0.0 }
 0x22c   :  { %v760_v12 = vadd.f32 %v752_v44, %v736_v18  ;;  %v763_v60 = vadd.f32 %v762_v31, %v761_v25  ;;  %v766_v9 = vsel %vm462_vm8, %v756_v48, 0.0  ;;  %v768_v45 = vsel %vm462_vm8, %v757_v52, 0.0 }
 0x22d   :  { %v770_v5 = vsel %vm462_vm8, %v758_v55, 0.0  ;;  %v772_v23 = vsel %vm462_vm8, %v759_v8, 0.0  ;;  %v466_v19 = vsel %vm462_vm8, %v1482_v54, -inf  ;;  %v472_v42 = vsel %vm462_vm8, %v1473_v14, -inf }
 0x22e   :  { %v765_v4 = vadd.f32 %v764_v33, %v763_v60  ;;  %v774_v28 = vsel %vm462_vm8, %v760_v12, 0.0  ;;  %v478_v2 = vsel %vm462_vm8, %v1539_v7, -inf  ;;  %v484_v58 = vsel %vm462_vm8, %v1545_v11, -inf }
 0x230   :  { %v767_v0 = vadd.f32 %v766_v9, %v765_v4 }
 0x232   :  { %v769_v47 = vadd.f32 %v768_v45, %v767_v0 }
 0x234   :  { %v771_v53 = vadd.f32 %v770_v5, %v769_v47 }
 0x236   :  { %v773_v37 = vadd.f32 %v772_v23, %v771_v53 }
 0x238   :  { %v775_v62 = vadd.f32 %v774_v28, %v773_v37 }
 0x23a   :  { %776 = vadd.xlane.f32.xlu0 %v775_v62 }
 0x23e   :  { %467 = vmax.xlane.f32.xlu0 %v466_v19  ;;  %v465_v51 = vpop.xlane.xlu1 %464 }
 0x23f   :  { %v487_v39 = vsub.f32 %v1466_v61, %v465_v51 }
 0x241   :  { %v495_v63 = vmul.f32 1.442695, %v487_v39 }
 0x242   :  { %473 = vmax.xlane.f32.xlu0 %v472_v42  ;;  %v471_v20 = vpop.xlane.xlu1 %470 }
 0x243   :  { %1009 = vpow2.f32 %v495_v63  ;;  %v489_v30 = vsub.f32 %v1476_v16, %v471_v20 }
 0x245   :  { %v499_v46 = vmul.f32 1.442695, %v489_v30 }
 0x246   :  { %479 = vmax.xlane.f32.xlu0 %v478_v2 }
 0x247   :  { %1011 = vpow2.f32 %v499_v46  ;;  %v477_v50 = vpop.xlane.xlu1 %476 }
 0x248   :  { %v491_v21 = vsub.f32 %v1526_v1, %v477_v50 }
 0x24a   :  { %485 = vmax.xlane.f32.xlu0 %v484_v58  ;;  %v503_v61 = vmul.f32 1.442695, %v491_v21 }
 0x24b   :  { %v483_v41 = vpop.xlane.xlu1 %482 }
 0x24c   :  { %1013 = vpow2.f32 %v503_v61  ;;  %v493_v36 = vsub.f32 %v1533_v56, %v483_v41 }
 0x24d   :  { %v1010_v15 = vpop.eup %1009 }
 0x24e   :  { %511 = vst.msk [vmem:[#allocation5] sm:$0xff] %vm462_vm8, %v1010_v15  ;;  %v507_v40 = vmul.f32 1.442695, %v493_v36 }
 0x250   :  { %1015 = vpow2.f32 %v507_v40 }
 0x251   :  { %v1012_v16 = vpop.eup %1011 }
 0x252   :  { %513 = vst.msk [vmem:[#allocation5 + $0x10] sm:$0xff] %vm462_vm8, %v1012_v16 }
 0x256   :  { %v1014_v29 = vpop.eup %1013 }
 0x257   :  { %515 = vst.msk [vmem:[#allocation5 + $0x20] sm:$0xff] %vm462_vm8, %v1014_v29 }
 0x25a   :  { %v1016_v49 = vpop.eup %1015 }
 0x25b   :  { %517 = vst.msk [vmem:[#allocation5 + $0x30] sm:$0xff] %vm462_vm8, %v1016_v49 }
 0x2c7   :  { %v777_v1 = vpop.xlane.xlu0 %776 }
 0x2c8   :  { %v778_v27 = vrot.slane %v777_v1, 4 }
 0x2ca   :  { %v779_v32 = vadd.f32 %v778_v27, %v777_v1 }
 0x2cb   :  { %v468_v22 = vpop.xlane.xlu0 %467 }
 0x2cc   :  { %v780_v26 = vrot.slane %v779_v32, 2  ;;  %v488_v56 = vsub.f32 %v1482_v54, %v468_v22 }
 0x2ce   :  { %v497_v59 = vmul.f32 1.442695, %v488_v56  ;;  %v781_v10 = vadd.f32 %v780_v26, %v779_v32 }
 0x2cf   :  { %v474_v13 = vpop.xlane.xlu0 %473 }
 0x2d0   :  { %1017 = vpow2.f32 %v497_v59  ;;  %v490_v57 = vsub.f32 %v1473_v14, %v474_v13  ;;  %v782_v34 = vrot.slane %v781_v10, 1 }
 0x2d2   :  { %v501_v3 = vmul.f32 1.442695, %v490_v57  ;;  %v783_v43 = vadd.f32 %v782_v34, %v781_v10 }
 0x2d3   :  { %v480_v6 = vpop.xlane.xlu0 %479 }
 0x2d4   :  { %1019 = vpow2.f32 %v501_v3  ;;  %v492_v18 = vsub.f32 %v1539_v7, %v480_v6  ;;  %883 = vpush %v783_v43 }
 0x2d6   :  { %v505_v17 = vmul.f32 1.442695, %v492_v18 }
 0x2d7   :  { %v486_v44 = vpop.xlane.xlu0 %485 }
 0x2d8   :  { %1021 = vpow2.f32 %v505_v17  ;;  %v494_v35 = vsub.f32 %v1545_v11, %v486_v44 }
 0x2da   :  { %v1018_v54 = vpop.eup %1017  ;;  %v509_v24 = vmul.f32 1.442695, %v494_v35 }
 0x2db   :  { %512 = vst.msk [vmem:[#allocation5 + $0x8] sm:$0xff] %vm462_vm8, %v1018_v54 }
 0x2dc   :  { %1023 = vpow2.f32 %v509_v24 }
 0x2de   :  { %v1020_v38 = vpop.eup %1019 }
 0x2df   :  { %514 = vst.msk [vmem:[#allocation5 + $0x18] sm:$0xff] %vm462_vm8, %v1020_v38 }
 0x2e2   :  { %v1022_v14 = vpop.eup %1021 }
 0x2e3   :  { %516 = vst.msk [vmem:[#allocation5 + $0x28] sm:$0xff] %vm462_vm8, %v1022_v14 }
 0x2e6   :  { %v1024_v7 = vpop.eup %1023 }
 0x2e7   :  { %518 = vst.msk [vmem:[#allocation5 + $0x38] sm:$0xff] %vm462_vm8, %v1024_v7 }
 0x2e8   :  { %1036 = shalt.err (!%p1033_p4)
}
 0x2e9   :  { %s1037_s28 = scalar_lea.hbm %s1834_s4, 1024 }
 0x2ea   :  { %p1038_p5 = scmp.ne.s32.totalorder %s1834_s4, %s1037_s28  ;;  %p1041_p6 = scmp.lt.u32.totalorder %s1037_s28, %s1834_s4 }
 0x2ec   :  { %p1043_p7 = pnand %p1041_p6, %p1038_p5 }
 0x2ee   :  { %1046 = shalt.err (!%p1043_p7)
}
 0x2ef   :  { %s1074_s7 = smov 128   ;;  %s1075_s8 = smov 8   ;;  %vm787_vm11 = vcmask 0  }
 0x2f0   :  { %810 = dma.vmem_to_hbm [thread:$0]  %s805_s24, 1024, %s1834_s4, [#allocation6], %s1074_s7, %s1074_s7, %s1075_s8  }
 0x2f1   :  { %s1076_s11 = smov [#allocation3]  }
 0x2f2   :  { %s795_s12 = sshll.u32 %s1076_s11, 4  ;;  %s796_s12 = int_to_ptr.vmem [resolvable:$true] %s795_s12 }
 0x2f3   :  { %s1047_s15 = scalar_lea.vmem %s796_s12, 16  ;;  %s1051_s16 = scalar_lea.vmem %s796_s12, 32 }
 0x2f4   :  { %p1048_p8 = scmp.ne.s32.totalorder %s796_s12, %s1047_s15  ;;  %p1052_p9 = scmp.lt.s32.totalorder %s796_s12, %s796_s12 }
 0x2f5   :  { %p1053_p10 = scmp.lt.s32.totalorder %s1051_s16, %s1047_s15 }
 0x2f7   :  { %p1054_p11 = por %p1053_p10, %p1052_p9 }
 0x2f9   :  { %p1055_p12 = pnand %p1054_p11, %p1048_p8 }
 0x305   :  { %s884_s13 = spop %883 }
 0x306   :  { %s785_s14 = smul.f32 0.5, %s884_s13 }
 0x308   :  { %v786_v11 = vstv %s785_s14 }
 0x309   :  { %788 = vst.msk [vmem:[#allocation3] sm:$0x1] %vm787_vm11, %v786_v11 }
 0x30a   :  { %1058 = shalt.err (!%p1055_p12)
}
 0x30b   :  { %s1059_s4 = scalar_lea.hbm %s1833_s3, 16 }
 0x30c   :  { %p1060_p13 = scmp.ne.s32.totalorder %s1833_s3, %s1059_s4  ;;  %p1063_p0 = scmp.lt.u32.totalorder %s1059_s4, %s1833_s3 }
 0x30e   :  { %p1065_p1 = pnand %p1063_p0, %p1060_p13 }
 0x310   :  { %1068 = shalt.err (!%p1065_p1)
}
 0x311   :  { %798 = dma.vmem_to_hbm [thread:$0]  %s796_s12, 16, %s1833_s3, [#allocation4]  }
 0x312   :  { %1069 = dma.done.wait [#allocation4], 16  }
 0x313   :  { %1070 = vsyncadd [#allocation4], 4294967280 }
 0x314   :  { %1071 = dma.done.wait [#allocation6], 1024  }
 0x315   :  { %1072 = vsyncadd [#allocation6], 4294966272 }
 0x316   :  { %817 = vsyncpa [#allocation4], 1 }
 0x317   :  { %818 = vsyncpa [#allocation6], 1 }

</bundles_post_ra>
